<compile_context>
chip_gen: v6e
topology: v6e:2x2x1
jax: 0.10.0
libtpu: 0.0.40
codegen_flags: <defaults>
</compile_context>

<pallas_src>
import functools

import jax
import jax.numpy as jnp
from jax import lax
from jax.experimental import pallas as pl
from jax.experimental.pallas import tpu as pltpu


def attention_head_kernel(x_ref, w_ref, o_ref, q_sc, k_sc, v_sc,
                          *, kv_len, tq, hp):
    # x_ref: (Tp, E)  full (padded) sequence for this batch element, resident
    #        across the inner query axis (block index constant in qi).
    # w_ref: (E, 3*Hp) fused [q*scale | k | v] weights, single-buffered.
    # o_ref: (tq, Hp)  output block for the current query tile.
    # q_sc/k_sc/v_sc: (Tp, Hp) VMEM scratch holding the projections.
    qi = pl.program_id(1)
    t_pad = x_ref.shape[0]

    # Project Q, K, V for the whole sequence once per batch element with a
    # single fused matmul; scratch persists across the "arbitrary" qi axis.
    @pl.when(qi == 0)
    def _():
        qkv = jnp.dot(x_ref[...], w_ref[...],
                      preferred_element_type=jnp.float32)   # (Tp, 3*Hp) f32
        q_sc[...] = qkv[:, :hp].astype(q_sc.dtype)
        k_sc[...] = qkv[:, hp:2 * hp].astype(k_sc.dtype)
        v_sc[...] = qkv[:, 2 * hp:].astype(v_sc.dtype)

    # Current query tile (static slice when there is a single tile).
    if tq == t_pad:
        q = q_sc[...]
    else:
        row = pl.multiple_of(qi * tq, tq)
        q = q_sc[pl.ds(row, tq), :]                          # (tq, Hp)

    # scores = q @ k^T without materializing a transpose.
    scores = lax.dot_general(q, k_sc[...], (((1,), (1,)), ((), ())),
                             preferred_element_type=jnp.float32)  # (tq, Tp)

    # Mask padded keys (static branch; compiled away when Tp == kv_len).
    if kv_len < t_pad:
        key_idx = lax.broadcasted_iota(jnp.int32, scores.shape, 1)
        scores = jnp.where(key_idx < kv_len, scores, -jnp.inf)

    # Numerically-stable softmax statistics in f32.
    m = jnp.max(scores, axis=-1, keepdims=True)
    e = jnp.exp(scores - m)
    denom = jnp.sum(e, axis=-1, keepdims=True)

    # Un-normalized e @ V on the MXU, then defer the normalization to the
    # small (tq, Hp) result (O(tq*Hp) instead of O(tq*Tp) multiplies).
    out_un = jnp.dot(e.astype(v_sc.dtype), v_sc[...],
                     preferred_element_type=jnp.float32)     # (tq, Hp) f32
    out = out_un * pl.reciprocal(denom, approx=True)
    o_ref[...] = out.astype(o_ref.dtype)


def _choose_tiles(T, tq=None, cap=256):
    """Pick (query_tile, padded_T). padded_T is a multiple of the tile."""
    if tq is None:
        # cap=256 keeps the f32 (tq, T) intermediates small enough for v7x's
        # 64 MiB VMEM while still saturating the MXU M dimension.
        tq = min(cap, max(8, ((T + 7) // 8) * 8))
    else:
        tq = max(8, ((tq + 7) // 8) * 8)
    t_pad = ((T + tq - 1) // tq) * tq
    return tq, t_pad


def attention_head(x, wq, wk, wv, *, compute_dtype=jnp.bfloat16, tq=None):
    """x: (B, T, E); wq/wk/wv: (E, H). Returns (B, T, H) in x.dtype.

    compute_dtype gates MXU operand precision: bf16 (default, ~3x MXU
    throughput for f32 inputs) or jnp.float32 for exactness.
    """
    B, T, E = x.shape
    E2, H = wq.shape
    assert E2 == E and wk.shape == (E, H) and wv.shape == (E, H)
    scale = H ** (-0.5)
    out_dtype = x.dtype
    cdt = jnp.dtype(compute_dtype)

    # Pad head dim to a lane-dense 128 (unmasked stores, full MXU lanes on
    # v5e). Zero-padded weight columns contribute exact zeros; sliced off.
    LANE = 128
    Hp = max(LANE, ((H + LANE - 1) // LANE) * LANE)

    wq32 = wq.astype(jnp.float32) * scale     # fold 1/sqrt(H) into Q weights
    wk32 = wk.astype(jnp.float32)
    wv32 = wv.astype(jnp.float32)
    if Hp != H:
        pad = ((0, 0), (0, Hp - H))
        wq32 = jnp.pad(wq32, pad)
        wk32 = jnp.pad(wk32, pad)
        wv32 = jnp.pad(wv32, pad)
    w_qkv = jnp.concatenate([wq32, wk32, wv32], axis=1).astype(cdt)  # (E,3Hp)

    tq, Tp = _choose_tiles(T, tq)
    if Tp != T:
        x = jnp.pad(x, ((0, 0), (0, Tp - T), (0, 0)))
    x_c = x.astype(cdt)
    num_q = Tp // tq

    kernel = functools.partial(attention_head_kernel,
                               kv_len=T, tq=tq, hp=Hp)

    # Generation-aware VMEM budget: clamp below physical capacity (v7x has
    # only 64 MiB per TensorCore) and account for all f32 temporaries.
    try:
        vmem_cap = int(pltpu.get_tpu_info().vmem_capacity_bytes)
    except Exception:
        vmem_cap = 64 * 1024 * 1024            # conservative (v7x size)
    isz_c = cdt.itemsize
    isz_o = jnp.dtype(out_dtype).itemsize
    est = (2 * Tp * E * isz_c                  # x block (double-buffered)
           + E * 3 * Hp * isz_c                # fused weights (Buffered(1))
           + 2 * tq * Hp * isz_o               # output block (double-buffered)
           + 3 * Tp * Hp * isz_c               # resident Q/K/V scratch
           + 3 * Tp * Hp * 4                   # f32 projection temp (qi == 0)
           + 2 * tq * Tp * 4                   # f32 scores + exp temporaries
           + 2 * tq * Hp * 4)                  # f32 un-normalized output
    hard_cap = min(int(0.85 * vmem_cap), 100 * 1024 * 1024)
    vmem_limit = int(min(hard_cap, max(32 * 1024 * 1024, 2 * est)))

    # Constant-index weights: a single buffer is enough (saves VMEM, zero
    # pipelining cost). Fall back gracefully if pipeline_mode is unsupported.
    try:
        w_spec = pl.BlockSpec((E, 3 * Hp), lambda b, qi: (0, 0),
                              pipeline_mode=pl.Buffered(1))
    except Exception:
        w_spec = pl.BlockSpec((E, 3 * Hp), lambda b, qi: (0, 0))

    out = pl.pallas_call(
        kernel,
        out_shape=jax.ShapeDtypeStruct((B, Tp, Hp), out_dtype),
        grid_spec=pltpu.PrefetchScalarGridSpec(
            num_scalar_prefetch=0,
            grid=(B, num_q),
            in_specs=[
                # Full (padded) sequence per batch element; block index is
                # constant across qi so it stays resident (no re-DMA).
                pl.BlockSpec((None, Tp, E), lambda b, qi: (b, 0, 0)),
                w_spec,
            ],
            out_specs=pl.BlockSpec((None, tq, Hp), lambda b, qi: (b, qi, 0)),
            scratch_shapes=[
                pltpu.VMEM((Tp, Hp), cdt),     # Q projection
                pltpu.VMEM((Tp, Hp), cdt),     # K projection
                pltpu.VMEM((Tp, Hp), cdt),     # V projection
            ],
        ),
        compiler_params=pltpu.CompilerParams(
            dimension_semantics=("parallel", "arbitrary"),
            vmem_limit_bytes=vmem_limit),
    )(x_c, w_qkv)

    return out[:, :T, :H]


def reference_attention_head(x, wq, wk, wv):
    """Pure-JAX reference matching the PyTorch forward."""
    H = wq.shape[1]
    q = jnp.einsum("bte,eh->bth", x, wq)
    k = jnp.einsum("bte,eh->bth", x, wk)
    v = jnp.einsum("bte,eh->bth", x, wv)
    scores = jnp.einsum("bqh,bkh->bqk", q, k) * (H ** -0.5)
    attn = jax.nn.softmax(scores, axis=-1)
    return jnp.einsum("bqk,bkh->bqh", attn, v)


if __name__ == "__main__":
    B, T, E, H = 2, 8, 32, 16

    key = jax.random.PRNGKey(0)
    kx, kq, kk, kv = jax.random.split(key, 4)

    x = jax.random.normal(kx, (B, T, E), dtype=jnp.float32)
    # nn.Linear(embed_size, head_size) weight is (head_size, embed_size);
    # transpose to (E, H) so the kernel computes x @ W.
    wq_t = jax.random.normal(kq, (H, E), dtype=jnp.float32) * (E ** -0.5)
    wk_t = jax.random.normal(kk, (H, E), dtype=jnp.float32) * (E ** -0.5)
    wv_t = jax.random.normal(kv, (H, E), dtype=jnp.float32) * (E ** -0.5)
    wq, wk, wv = wq_t.T, wk_t.T, wv_t.T

    ref = reference_attention_head(x, wq, wk, wv)

    # Fast path: bf16 MXU operands, f32 accumulation / softmax statistics.
    out = jax.block_until_ready(attention_head(x, wq, wk, wv))
    assert out.shape == (B, T, H)
    assert out.dtype == x.dtype
    assert jnp.allclose(out, ref, atol=2e-2, rtol=2e-2), "bf16 path mismatch"

    # Accuracy path: f32 operands end-to-end.
    out_f32 = jax.block_until_ready(
        attention_head(x, wq, wk, wv, compute_dtype=jnp.float32))
    assert jnp.allclose(out_f32, ref, atol=1e-2, rtol=1e-2), "f32 path mismatch"

    print("KERNEL_OK")
</pallas_src>

<mosaic_0001>
module attributes {stable_mosaic.version = 11 : i64} {
  func.func @attention_head_kernel(%arg0: i32, %arg1: i32, %arg2: memref<1x8x32xbf16, #tpu.memory_space<vmem>>, %arg3: memref<32x384xbf16, #tpu.memory_space<vmem>>, %arg4: memref<1x8x128xf32, #tpu.memory_space<vmem>>, %arg5: memref<8x128xbf16, #tpu.memory_space<vmem>>, %arg6: memref<8x128xbf16, #tpu.memory_space<vmem>>, %arg7: memref<8x128xbf16, #tpu.memory_space<vmem>>) attributes {dimension_semantics = [#tpu.dimension_semantics<parallel>, #tpu.dimension_semantics<arbitrary>], iteration_bounds = array<i64: 2, 1>, scalar_prefetch = 0 : i64, scratch_operands = 3 : i64, tpu.core_type = #tpu.core_type<tc>, window_params = [{transform_indices = @transform_0, window_bounds = array<i64: 1, 8, 32>}, {pipeline_mode = #tpu.pipeline_mode<synchronous>, transform_indices = @transform_1, window_bounds = array<i64: 32, 384>}, {transform_indices = @transform_2, window_bounds = array<i64: 1, 8, 128>}]} {
    %c0_i32 = arith.constant 0 : i32
    %0 = arith.cmpi eq, %arg1, %c0_i32 : i32
    %1 = arith.extui %0 : i1 to i32
    %c0_i32_0 = arith.constant 0 : i32
    %2 = arith.cmpi ne, %1, %c0_i32_0 : i32
    scf.if %2 {
      %c0_12 = arith.constant 0 : index
      %c0_13 = arith.constant 0 : index
      %c0_14 = arith.constant 0 : index
      %22 = vector.load %arg2[%c0_12, %c0_13, %c0_14] : memref<1x8x32xbf16, #tpu.memory_space<vmem>>, vector<1x8x32xbf16>
      %23 = vector.shape_cast %22 : vector<1x8x32xbf16> to vector<8x32xbf16>
      %c0_15 = arith.constant 0 : index
      %c0_16 = arith.constant 0 : index
      %24 = vector.load %arg3[%c0_15, %c0_16] : memref<32x384xbf16, #tpu.memory_space<vmem>>, vector<32x384xbf16>
      %cst_17 = arith.constant dense<0.000000e+00> : vector<8x384xf32>
      %25 = tpu.matmul %23, %24, %cst_17 {dimension_numbers = #tpu.dot_dimension_numbers<[1], [0], [0], [1], [0, 0, 1, 1], [], []>} : vector<8x32xbf16>, vector<32x384xbf16>, vector<8x384xf32> -> vector<8x384xf32>
      %26 = vector.extract_strided_slice %25 {offsets = [0, 0], sizes = [8, 128], strides = [1, 1]} : vector<8x384xf32> to vector<8x128xf32>
      %27 = arith.truncf %26 : vector<8x128xf32> to vector<8x128xbf16>
      %c0_18 = arith.constant 0 : index
      %c0_19 = arith.constant 0 : index
      %28 = vector.load %arg5[%c0_18, %c0_19] : memref<8x128xbf16, #tpu.memory_space<vmem>>, vector<8x128xbf16>
      tpu.vector_store %arg5[%c0_18, %c0_19], %27 {strides = array<i32>} : memref<8x128xbf16, #tpu.memory_space<vmem>>, vector<8x128xbf16>,
      %29 = vector.extract_strided_slice %25 {offsets = [0, 128], sizes = [8, 128], strides = [1, 1]} : vector<8x384xf32> to vector<8x128xf32>
      %30 = arith.truncf %29 : vector<8x128xf32> to vector<8x128xbf16>
      %c0_20 = arith.constant 0 : index
      %c0_21 = arith.constant 0 : index
      %31 = vector.load %arg6[%c0_20, %c0_21] : memref<8x128xbf16, #tpu.memory_space<vmem>>, vector<8x128xbf16>
      tpu.vector_store %arg6[%c0_20, %c0_21], %30 {strides = array<i32>} : memref<8x128xbf16, #tpu.memory_space<vmem>>, vector<8x128xbf16>,
      %32 = vector.extract_strided_slice %25 {offsets = [0, 256], sizes = [8, 128], strides = [1, 1]} : vector<8x384xf32> to vector<8x128xf32>
      %33 = arith.truncf %32 : vector<8x128xf32> to vector<8x128xbf16>
      %c0_22 = arith.constant 0 : index
      %c0_23 = arith.constant 0 : index
      %34 = vector.load %arg7[%c0_22, %c0_23] : memref<8x128xbf16, #tpu.memory_space<vmem>>, vector<8x128xbf16>
      tpu.vector_store %arg7[%c0_22, %c0_23], %33 {strides = array<i32>} : memref<8x128xbf16, #tpu.memory_space<vmem>>, vector<8x128xbf16>,
    } else {
    }
    %c0 = arith.constant 0 : index
    %c0_1 = arith.constant 0 : index
    %3 = vector.load %arg5[%c0, %c0_1] : memref<8x128xbf16, #tpu.memory_space<vmem>>, vector<8x128xbf16>
    %c0_2 = arith.constant 0 : index
    %c0_3 = arith.constant 0 : index
    %4 = vector.load %arg6[%c0_2, %c0_3] : memref<8x128xbf16, #tpu.memory_space<vmem>>, vector<8x128xbf16>
    %cst = arith.constant dense<0.000000e+00> : vector<8x8xf32>
    %5 = tpu.matmul %3, %4, %cst {dimension_numbers = #tpu.dot_dimension_numbers<[1], [1], [0], [0], [0, 0, 1, 0], [], []>} : vector<8x128xbf16>, vector<8x128xbf16>, vector<8x8xf32> -> vector<8x8xf32>
    %cst_4 = arith.constant dense<0xFF800000> : vector<8xf32>
    %6 = vector.multi_reduction <maximumf>, %5, %cst_4 [1] : vector<8x8xf32> to vector<8xf32>
    %7 = vector.shape_cast %6 : vector<8xf32> to vector<8x1xf32>
    %8 = vector.broadcast %7 : vector<8x1xf32> to vector<8x8xf32>
    %9 = arith.subf %5, %8 : vector<8x8xf32>
    %10 = math.exp %9 : vector<8x8xf32>
    %cst_5 = arith.constant dense<0.000000e+00> : vector<8xf32>
    %11 = vector.multi_reduction <add>, %10, %cst_5 [1] : vector<8x8xf32> to vector<8xf32>
    %12 = vector.shape_cast %11 : vector<8xf32> to vector<8x1xf32>
    %13 = arith.truncf %10 : vector<8x8xf32> to vector<8x8xbf16>
    %c0_6 = arith.constant 0 : index
    %c0_7 = arith.constant 0 : index
    %14 = vector.load %arg7[%c0_6, %c0_7] : memref<8x128xbf16, #tpu.memory_space<vmem>>, vector<8x128xbf16>
    %cst_8 = arith.constant dense<0.000000e+00> : vector<8x128xf32>
    %15 = tpu.matmul %13, %14, %cst_8 {dimension_numbers = #tpu.dot_dimension_numbers<[1], [0], [0], [1], [0, 0, 1, 1], [], []>} : vector<8x8xbf16>, vector<8x128xbf16>, vector<8x128xf32> -> vector<8x128xf32>
    %16 = tpu.reciprocal %12 {approx = true} : vector<8x1xf32> -> vector<8x1xf32>
    %17 = vector.broadcast %16 : vector<8x1xf32> to vector<8x128xf32>
    %18 = arith.mulf %15, %17 : vector<8x128xf32>
    %c0_9 = arith.constant 0 : index
    %c0_10 = arith.constant 0 : index
    %c0_11 = arith.constant 0 : index
    %19 = vector.load %arg4[%c0_9, %c0_10, %c0_11] : memref<1x8x128xf32, #tpu.memory_space<vmem>>, vector<1x8x128xf32>
    %20 = vector.shape_cast %19 : vector<1x8x128xf32> to vector<8x128xf32>
    %21 = vector.shape_cast %18 : vector<8x128xf32> to vector<1x8x128xf32>
    tpu.vector_store %arg4[%c0_9, %c0_10, %c0_11], %21 {strides = array<i32>} : memref<1x8x128xf32, #tpu.memory_space<vmem>>, vector<1x8x128xf32>,
    return
  }
  func.func @transform_0(%arg0: i32, %arg1: i32) -> (i32, i32, i32) {
    %c0_i32 = arith.constant 0 : i32
    %c0_i32_0 = arith.constant 0 : i32
    %c0_i32_1 = arith.constant 0 : i32
    return %arg0, %c0_i32, %c0_i32_0 : i32, i32, i32
  }
  func.func @transform_1(%arg0: i32, %arg1: i32) -> (i32, i32) {
    %c0_i32 = arith.constant 0 : i32
    %c0_i32_0 = arith.constant 0 : i32
    %c0_i32_1 = arith.constant 0 : i32
    return %c0_i32, %c0_i32_0 : i32, i32
  }
  func.func @transform_2(%arg0: i32, %arg1: i32) -> (i32, i32, i32) {
    %c0_i32 = arith.constant 0 : i32
    %c0_i32_0 = arith.constant 0 : i32
    return %arg0, %arg1, %c0_i32 : i32, i32, i32
  }
}

</mosaic_0001>

<bundles_post_ra>
// kernel: tpu_custom_call.1
= control target key start
LH: loop header
LB: loop body
LE: loop exit
PB: predicated region body
PF: predicated region fallthrough
CT: control target
= control target key end

     0   :  { %7 = vsyncpa [#allocation6], 0  ;;  %s1020_s0 = inlined_call_operand.hbm [shape: bf16[2,8,32], index: 0, kind: input, shape index: {}]   ;;  %s1021_s1 = inlined_call_operand.hbm [shape: bf16[32,384], index: 1, kind: input, shape index: {}]   ;;  %s1022_s2 = inlined_call_operand.hbm [shape: f32[2,8,128], index: 2, kind: output, shape index: {}]  }
   0x1   :  { %9 = vsyncpa [#allocation6 + $0x1], 0 }
   0x2   :  { %10 = vsyncpa [#allocation9], 0 }
   0x3   :  { %11 = vsyncpa [#allocation7], 0 }
   0x4   :  { %13 = vsyncpa [#allocation7 + $0x1], 0  ;;  %s837_s9 = smov 0   ;;  %s839_s10 = smov 0  }
   0x5   :  { %s841_s11 = smov 0   ;;  %s843_s12 = smov 0  }
   0x6   :  { %s845_s13 = smov 0   ;;  %s847_s14 = smov 0  }
   0x7 LB: > { %s533_s15 = sadd.s32 4294967295, %s812_s14   ;;  %s534_s16 = sadd.s32 4294967294, %s812_s14   ;;  %s812_s14 = sphi %s847_s14, %s19_s14   ;;  %s808_s13 = sphi %s845_s13, %s1040_s13   ;;  %s804_s12 = sphi %s843_s12, %s1039_s12   ;;  %s800_s11 = sphi %s841_s11, %s1038_s11   ;;  %s796_s10 = sphi %s839_s10, %s1037_s10   ;;  %s792_s9 = sphi %s837_s9, %s1036_s9  }
   0x8   : > { %p51_p0 = scmp.ne.s32.totalorder %s796_s10, %s792_s9  ;;  %p871_p1 = scmp.eq.s32.totalorder %s533_s15, 0 }
   0x9   : > { %p875_p2 = scmp.eq.s32.totalorder %s533_s15, 1  ;;  %p104_p3 = scmp.eq.s32.totalorder %s534_s16, 1 }
   0xa   : > { %p881_p4 = por %p871_p1, %p51_p0  ;;  %p535_p5 = scmp.ge.s32.totalorder %s812_s14, 1 }
   0xb   : > { %p886_p6 = por %p104_p3, %p51_p0  ;;  %p111_p7 = scmp.lt.s32.totalorder %s812_s14, 3 }
   0xc   : > { %s1026_s19 = scalar_select %p881_p4, 1, 0 }
   0xd   : > { %s1027_s20 = scalar_select %p886_p6, 1, 0 }
   0xe   : > { %p891_p8 = pnand %p535_p5, %p111_p7  ;;  %s814_s22 = smov [#allocation8]  }
   0xf   : > { %s123_s23 = sshll.u32 %s814_s22, 4  ;;  %s31_s25 = sadd.s32 1, %s808_s13  ;;  %s124_s23 = int_to_ptr.vmem [resolvable:$true] %s123_s23 }
  0x10   : > { %p592_p9 = pneg %p891_p8  ;;  %s685_s26 = scalar_lea.vmem %s124_s23, 768 }
  0x11   : > { %p686_p13 = scmp.ne.s32.totalorder %s124_s23, %s685_s26  ;;  %p693_p5 = scmp.lt.s32.totalorder %s124_s23, %s124_s23 }
  0x12   : > { %p900_p11 = pnand %p592_p9, %p871_p1  ;;  %p694_p7 = scmp.lt.s32.totalorder %s685_s26, %s685_s26 }
  0x14   : > { %p676_p12 = pneg %p900_p11  ;;  %p695_p6 = por %p694_p7, %p693_p5 }
  0x16   : > { %p688_p0 = pnand %p686_p13, %p676_p12 }
  0x18   : > { %p689_p3 = pneg %p688_p0 }
  0x1a   : > { %p696_p4 = pnand %p695_p6, %p689_p3 }
  0x1c   : > { %699 = shalt.err (!%p696_p4)
}
  0x1d   : > { %s815_s27 = smov 192   ;;  %s816_s28 = smov 12  }
  0x1e   : > { %595 = dma.hbm_to_vmem [thread:$0]  (!%p900_p11), %s1021_s1, 768, %s124_s23, [#allocation9], %s815_s27, %s815_s27, %s816_s28  }
  0x1f   : > { %p33_p6 = scmp.ge.s32.totalorder %s31_s25, 2  ;;  %s38_s3 = sadd.s32 1, %s800_s11 }
  0x20   : > { %p45_p4 = scmp.ne.s32.totalorder %s800_s11, %s796_s10  ;;  %p46_p9 = scmp.eq.s32.totalorder %s812_s14, 0 }
  0x21   : > { %s1042_s25 = smov (%p33_p6, %s31_s25), 0  ;;  %p605_p0 = scmp.lt.s32.totalorder %s812_s14, 2 }
  0x22   : > { %p918_p12 = por %p46_p9, %p45_p4  ;;  %p924_p13 = por %p875_p2, %p45_p4 }
  0x23   : > { %s35_s6 = ssub.s32 %s808_s13, %s1042_s25  ;;  %s137_s7 = sand.u32 1, %s800_s11  }
  0x24   : > { %p36_p11 = scmp.eq.s32.totalorder %s35_s6, 0  ;;  %s538_s8 = sshll.u32 %s137_s7, 2 }
  0x25   : > { %s539_s16 = sshll.u32 %s808_s13, 6  ;;  %s141_s26 = scalar_lea.vmem [#allocation5], %s538_s8 }
  0x26   : > { %s933_s15 = scalar_select %p36_p11, %s800_s11, %s38_s3  }
  0x27   : > { %s146_s24 = scalar_lea.hbm %s1020_s0, %s539_s16  ;;  %s148_s27 = sshll.u32 %s141_s26, 4  ;;  %s149_s27 = int_to_ptr.vmem [resolvable:$true] %s148_s27 }
  0x28   : > { %p941_p2 = pnand %p605_p0, %p918_p12  ;;  %s138_s28 = scalar_lea.sflag [#allocation6], %s137_s7 }
  0x29   : > { %s713_s29 = scalar_lea.vmem %s149_s27, 64  ;;  %s817_s30 = smov [#allocation5]  }
  0x2a   : > { %p702_p3 = pneg %p941_p2  ;;  %p714_p5 = scmp.ne.s32.totalorder %s149_s27, %s713_s29 }
  0x2b   : > { %s718_s3 = sshll.u32 %s817_s30, 4  ;;  %s719_s3 = int_to_ptr.vmem [resolvable:$false] %s718_s3 }
  0x2c   : > { %p716_p7 = pnand %p714_p5, %p702_p3  ;;  %s720_s6 = scalar_lea.vmem %s719_s3, 128 }
  0x2d   : > { %p721_p4 = scmp.lt.s32.totalorder %s149_s27, %s719_s3  ;;  %p722_p9 = scmp.lt.s32.totalorder %s720_s6, %s713_s29 }
  0x2e   : > { %p717_p6 = pneg %p716_p7 }
  0x2f   : > { %p723_p11 = por %p722_p9, %p721_p4 }
  0x31   : > { %p724_p10 = pnand %p723_p11, %p717_p6 }
  0x33   : > { %727 = shalt.err (!%p724_p10)
}
  0x34   : > { %599 = dma.hbm_to_vmem [thread:$0]  (!%p941_p2), %s146_s24, 64, %s149_s27, %s138_s28  }
  0x35   : > { %157 = sbr.rel (%p891_p8) target bundleno = 843 (0x34b), region = 28  ;;  %s952_s4 = sand.u32 (!%p891_p8), 1, %s796_s10  }
  0x36   : > { %s541_s7 = sshll.u32 (!%p891_p8), %s952_s4, 2  ;;  %s160_s8 = scalar_lea.sflag (!%p891_p8), [#allocation6], %s952_s4 }
  0x37   : > { %s163_s16 = scalar_lea.vmem (!%p891_p8), [#allocation5], %s541_s7  ;;  %p1033_p12 = scmp.ne.s32.totalorder (!%p891_p8), %s1026_s19, 0 }
  0x3a   : > { %779 = dma.done.wait (%p1033_p12), %s160_s8, 64  }
  0x3b   : > { %781 = vsyncadd (%p1033_p12), %s160_s8, 4294967232 }
  0x3c   : > { %783 = dma.done.wait (%p871_p1), [#allocation9], 768  }
  0x3d   : > { %785 = vsyncadd (%p871_p1), [#allocation9], 4294966528  ;;  %v818_v0 = vmov 0   ;;  %v662_v1 = vld [vmem:[#allocation8 + $0x1c] ss:$12 sps:$4 sm:$0xff]   ;;  %vm234_vm0 = vcmask 261120  }
  0x3e   : > { %270 = vmatprep.mubr.bf16.mxu0 %v818_v0  ;;  %v664_v2 = vld [vmem:[#allocation8 + $0x18] ss:$12 sps:$4 sm:$0xff]   ;;  %250 = vmatprep.subr.bf16.mxu0 %v662_v1  ;;  %v667_v4 = vld [vmem:[#allocation8] ss:$12 sps:$4 sm:$0xff]   ;;  %v819_v6 = vmov 0.0   ;;  %vm820_vm1 = vmmov 0  }
  0x3f   : > { %v665_v3 = vld [vmem:[#allocation8 + $0x4] ss:$12 sps:$4 sm:$0xff]   ;;  %251 = vmatpush1.bf16.msra.mxu0 %v664_v2  ;;  %v193_v5 = vld [vmem:[%s163_s16] sm:$0xf]  ;;  %564 = vmatprep.subr.bf16.mxu1 %v819_v6  ;;  %v668_v7 = vld [vmem:[#allocation8 + $0x20] ss:$12 sps:$4 sm:$0xff]  }
  0x40   : > { %252 = vmatprep.subr.bf16.mxu0 %v665_v3  ;;  %568 = vmatprep.mubr.msk.bf16.mxu1 %vm820_vm1, %v819_v6  ;;  %v669_v8 = vld [vmem:[#allocation8 + $0x8] ss:$12 sps:$4 sm:$0xff]   ;;  %vm367_vm2 = vcmask 64512   ;;  %vm382_vm3 = vcmask 1043456   ;;  %s543_s17 = sshll.u32 %s952_s4, 3  ;;  %s554_s19 = sshll.u32 %s804_s12, 7 }
  0x41   : > { %565 = vmatpush3.bf16.msra.mxu1 %v668_v7  ;;  %s187_s21 = scalar_lea.vmem [#allocation10], %s543_s17  ;;  %s972_s26 = scalar_lea.hbm %s1022_s2, %s554_s19 }
  0x42   : > { %566 = vmatprep.subr.bf16.mxu1 %v819_v6  ;;  %s444_s22 = sshll.u32 %s187_s21, 4  ;;  %s430_s27 = scalar_lea.sflag [#allocation7], %s952_s4  ;;  %s974_s22 = int_to_ptr.vmem [resolvable:$true] %s444_s22 }
  0x43   : > { %253 = vmatpush1.bf16.msra.mxu0 %v667_v4  ;;  %s728_s12 = scalar_lea.vmem %s974_s22, 128  ;;  %s821_s18 = smov [#allocation10]  }
  0x44   : > { %572 = vmatprep.subr.bf16.mxu0 %v819_v6  ;;  %p729_p1 = scmp.ne.s32.totalorder %s974_s22, %s728_s12  ;;  %s732_s28 = sshll.u32 %s821_s18, 4  ;;  %s733_s28 = int_to_ptr.vmem [resolvable:$false] %s732_s28 }
  0x45   : > { %567 = vmatpush3.bf16.msra.mxu1 %v669_v8  ;;  %s734_s29 = scalar_lea.vmem %s733_s28, 256  ;;  %p735_p0 = scmp.lt.s32.totalorder %s974_s22, %s733_s28 }
  0x46   : > { %550 = vmatmul.mubr.msk.bf16.vlgmr.msra.gmra.mxu0 %vm234_vm0, %v193_v5  ;;  %578 = vmatprep.subr.bf16.mxu1 %v819_v6  ;;  %p730_p8 = pnand %p729_p1, %p924_p13  ;;  %p736_p2 = scmp.lt.s32.totalorder %s734_s29, %s728_s12 }
  0x47   : > { %574 = vmatprep.mubr.msk.bf16.mxu0 %vm820_vm1, %v819_v6 }
  0x48   : > { %569 = vmatmul.mubr.msk.bf16.vlgmr.msra.gmra.mxu1 %vm234_vm0, %v193_v5  ;;  %p731_p10 = pneg %p730_p8  ;;  %p737_p3 = por %p736_p2, %p735_p0 }
  0x49   : > { %580 = vmatprep.mubr.msk.bf16.mxu1 %vm820_vm1, %v819_v6 }
  0x4a   : > { %p738_p5 = pnand %p737_p3, %p731_p10 }
 0x106   : > { %v272_v9 = vpop.f32.mrf.mxu0 }
 0x107   : > { %v319_v10 = vpack.c.bf16 %v272_v9, %v272_v9 }
 0x108   : > { %v274_v11 = vpop.f32.mrf.mxu0  ;;  %v313_v17 = vpop.f32.mrf.mxu1 }
 0x109   : > { %320 = vst [vmem:[#allocation2] sm:$0xf] %v319_v10  ;;  %v321_v12 = vpack.c.bf16 %v274_v11, %v274_v11  ;;  %v323_v18 = vpack.c.bf16 %v313_v17, %v313_v17 }
 0x10a   : > { %v276_v13 = vpop.f32.mrf.mxu0  ;;  %v570_v19 = vpop.f32.mrf.mxu1 }
 0x10b   : > { %322 = vst [vmem:[#allocation3] sm:$0xf] %v321_v12  ;;  %324 = vst [vmem:[#allocation4] sm:$0xf] %v323_v18 }
 0x10c   : > { %v277_v14 = vpop.f32.mrf.mxu0  ;;  %v316_v20 = vpop.f32.mrf.mxu1 }
 0x10e   : > { %v571_v21 = vpop.f32.mrf.mxu1 }
 0x110   : > { %v325_v16 = vld [vmem:[#allocation2] sm:$0xf] }
 0x112   : > { %v326_v15 = vld [vmem:[#allocation3] sm:$0xf]  ;;  %v378_v27 = vld [vmem:[#allocation4] sm:$0xf] }
 0x113   : > { %573 = vmatpush3.bf16.xpose.msra.mxu0 %v326_v15  ;;  %v384_v28 = vsel %vm382_vm3, %v378_v27, 0 }
 0x114   : > { %579 = vmatpush3.bf16.msra.mxu1 %v384_v28 }
 0x11a   : > { %575 = vmatmul.mubr.bf16.vlgmr.msra.gmra.mxu0 %v325_v16 }
 0x1da   : > { %v361_v22 = vpop.f32.mrf.mxu0 }
 0x1db   : > { %v368_v23 = vsel %vm367_vm2, %v361_v22, -inf }
 0x1dc   : > { %369 = vmax.xlane.f32.xlu0 %v368_v23  ;;  %v576_v24 = vpop.f32.mrf.mxu0 }
 0x1de   : > { %v364_v25 = vpop.f32.mrf.mxu0 }
 0x1e0   : > { %v577_v26 = vpop.f32.mrf.mxu0 }
 0x265   : > { %v370_v29 = vpop.xlane.xlu0 %369 }
 0x266   : > { %v371_v30 = vsub.f32 %v361_v22, %v370_v29 }
 0x268   : > { %v372_v31 = vmul.f32 1.442695, %v371_v30 }
 0x26a   : > { %670 = vpow2.f32 %v372_v31 }
 0x277   : > { %v671_v32 = vpop.eup %670 }
 0x278   : > { %v374_v33 = vsel %vm367_vm2, %v671_v32, 0.0  ;;  %v377_v34 = vpack.c.bf16 %v671_v32, %v671_v32 }
 0x279   : > { %375 = vadd.xlane.f32.xlu0 %v374_v33 }
 0x27a   : > { %581 = vmatmul.mubr.msk.bf16.vlgmr.msra.gmra.mxu1 %vm367_vm2, %v377_v34 }
 0x302   : > { %v376_v35 = vpop.xlane.xlu0 %375 }
 0x303   : > { %672 = vrcp.f32 %v376_v35 }
 0x310   : > { %v673_v36 = vpop.eup %672 }
 0x33a   : > { %v420_v37 = vpop.f32.mrf.mxu1 }
 0x33b   : > { %v427_v38 = vmul.f32 %v673_v36, %v420_v37 }
 0x33c   : > { %v582_v39 = vpop.f32.mrf.mxu1 }
 0x33d   : > { %428 = vst [vmem:[%s187_s21] sm:$0xff] %v427_v38 }
 0x33e   : > { %v423_v40 = vpop.f32.mrf.mxu1 }
 0x33f   : > { %741 = shalt.err (!%p738_p5)
}
 0x340   : > { %s742_s30 = scalar_lea.hbm %s972_s26, 128  ;;  %s746_s4 = scalar_lea.hbm %s1022_s2, 256 }
 0x341   : > { %p743_p7 = scmp.ne.s32.totalorder %s972_s26, %s742_s30  ;;  %p747_p9 = scmp.lt.s32.totalorder %s972_s26, %s1022_s2 }
 0x342   : > { %p748_p11 = scmp.lt.s32.totalorder %s746_s4, %s742_s30 }
 0x343   : > { %p744_p6 = pnand %p743_p7, %p924_p13 }
 0x344   : > { %p749_p12 = por %p748_p11, %p747_p9 }
 0x345   : > { %p745_p4 = pneg %p744_p6 }
 0x347   : > { %p750_p1 = pnand %p749_p12, %p745_p4 }
 0x349   : > { %753 = shalt.err (!%p750_p1)
}
 0x34a   : > { %590 = dma.vmem_to_hbm [thread:$0]  (%p924_p13), %s974_s22, 128, %s972_s26, %s430_s27   ;;  %v583_v41 = vpop.f32.mrf.mxu1 }
 0x34b PF: > { %s456_s16 = sand.u32 1, %s792_s9   ;;  %p1034_p8 = scmp.ne.s32.totalorder %s1027_s20, 0 }
 0x34c   : > { %p1035_p10 = scmp.ge.s32.totalorder %s812_s14, 2  ;;  %s457_s17 = scalar_lea.sflag [#allocation7], %s456_s16 }
 0x34e   : > { %p601_p0 = pnand %p1035_p10, %p1034_p8 }
 0x350   : > { %p602_p2 = pneg %p601_p0 }
 0x352   : > { %787 = dma.done.wait (%p602_p2), %s457_s17, 128  }
 0x353   : > { %789 = vsyncadd (%p602_p2), %s457_s17, 4294967168  ;;  %s19_s14 = sadd.s32 1, %s812_s14   ;;  %s1036_s9 = smov %s796_s10 }
 0x354   : > { %p16_p3 = scmp.ge.s32.totalorder %s19_s14, 4   ;;  %s1037_s10 = smov %s800_s11 }
 0x355   : > { %s1038_s11 = smov %s933_s15  ;;  %s1039_s12 = smov %s808_s13 }
 0x356   : > { %s1040_s13 = smov %s1042_s25  ;;  %18 = sbr.rel (!%p16_p3) target bundleno = 7 (0x7), region = 81 }
 0x35b   :  { %462 = vsyncpa [#allocation6], 1 }
 0x35c   :  { %464 = vsyncpa [#allocation6 + $0x1], 1 }
 0x35d   :  { %465 = vsyncpa [#allocation9], 1 }
 0x35e   :  { %466 = vsyncpa [#allocation7], 1 }
 0x35f   :  { %468 = vsyncpa [#allocation7 + $0x1], 1 }

</bundles_post_ra>
